<compile_context>
chip_gen: v7x
topology: tpu7x:2x2x1
jax: 0.10.0
libtpu: 0.0.40
codegen_flags: <defaults>
</compile_context>

<pallas_src>
import jax
import jax.numpy as jnp
import numpy as np
from jax.experimental import pallas as pl
from jax.experimental.pallas import tpu as pltpu


# -----------------------------------------------------------------------------
# Fused kernel: synthetic inner model (3 de-duplicated CFG branches) + CFG
# combine epilogue.  All tensors are lane-dense [C, HW_tile].
# -----------------------------------------------------------------------------
def _cfg_denoiser_kernel(params_ref, z_ref, ccond_ref, cuncond_ref,
                         w1a_ref, w1b_ref, ctx_ref, out_ref):
    sigma = params_ref[0]                       # scalars from SMEM
    t = params_ref[1]
    i = params_ref[2]
    scale = 1.0 / (sigma * sigma + 1.0)         # same sigma for all 3 branches

    # Unique MXU matmuls (lane-dense: [Cout, Cin] @ [Cin, HW_tile]).
    #   fz shared by all 3 branches, fc by branches {cond, img_cond}.
    fz = jnp.dot(w1a_ref[...], z_ref[...], preferred_element_type=jnp.float32)
    fc = jnp.dot(w1b_ref[...], ccond_ref[...], preferred_element_type=jnp.float32)
    fu = jnp.dot(w1b_ref[...], cuncond_ref[...], preferred_element_type=jnp.float32)

    ctx_c = ctx_ref[:, 0:1]                     # [C, 1] text bias (cond)
    ctx_u = ctx_ref[:, 1:2]                     # [C, 1] text bias (uncond)

    # Branch outputs of the (linear) inner model, kept in registers only.
    out_cond     = (fz + fc + ctx_c) * scale
    out_img_cond = (fz + fc + ctx_u) * scale
    out_uncond   = (fz + fu + ctx_u) * scale

    # Classifier-free-guidance combination (epilogue, VPU).
    out_ref[...] = (out_uncond
                    + t * (out_cond - out_img_cond)
                    + i * (out_img_cond - out_uncond))


def _cfg_denoiser_pallas(params, z_l, ccond_l, cuncond_l, w1a, w1b, ctx):
    """params: [3] SMEM (sigma, text_scale, image_scale); others lane-dense."""
    c, hw = z_l.shape
    c_cc = ccond_l.shape[0]

    # Lane-dense HW tiling: multiple of 128 (or the full dim).  An even split
    # gives v7x's two TensorCores balanced work; v5e/v6e just loop (cheap).
    # TODO(synk): at real latent sizes (HW~4096, Cin~640) cap the tile and set
    # pltpu.CompilerParams(vmem_limit_bytes=...) for v7x's 64 MiB VMEM.
    hw_tile = hw // 2 if hw % 256 == 0 else hw
    grid = (hw // hw_tile,)

    return pl.pallas_call(
        _cfg_denoiser_kernel,
        out_shape=jax.ShapeDtypeStruct((c, hw), jnp.float32),
        grid=grid,
        in_specs=[
            pl.BlockSpec(memory_space=pltpu.MemorySpace.SMEM),      # params [3]
            pl.BlockSpec((c, hw_tile), lambda j: (0, j)),           # z        [C, HW]
            pl.BlockSpec((c_cc, hw_tile), lambda j: (0, j)),        # cond_cc  [Ccc, HW]
            pl.BlockSpec((c_cc, hw_tile), lambda j: (0, j)),        # uncond_cc
            pl.BlockSpec((c, c), lambda j: (0, 0)),                 # W1a (resident)
            pl.BlockSpec((c, c_cc), lambda j: (0, 0)),              # W1b (resident)
            pl.BlockSpec((c, 2), lambda j: (0, 0)),                 # ctx bias [C, 2]
        ],
        out_specs=pl.BlockSpec((c, hw_tile), lambda j: (0, j)),
        compiler_params=pltpu.CompilerParams(
            dimension_semantics=("parallel",)),
    )(params, z_l, ccond_l, cuncond_l, w1a, w1b, ctx)


# -----------------------------------------------------------------------------
# CFGDenoiser.forward — all layout work is free reshapes; one pallas_call.
# -----------------------------------------------------------------------------
@jax.jit
def cfg_denoiser_forward(z, sigma, cond_ca, cond_cc, uncond_ca, uncond_cc,
                         text_cfg_scale, image_cfg_scale, w1t, w2):
    # z: [1, C, H, W] (NCHW), sigma: [1]
    _, c, h, w = z.shape
    hw = h * w
    c_cc = cond_cc.shape[1]

    # Lane-dense [C, HW] — pure reshape of NCHW (no transpose), no tile(z, 3),
    # no duplicated c_concat: each unique tensor goes to HBM exactly once.
    z_l = z.reshape(c, hw)
    ccond_l = cond_cc.reshape(c_cc, hw)
    cuncond_l = uncond_cc.reshape(c_cc, hw)

    # Hoisted text-conditioning path: mean over sequence, project to channels.
    # (Tiny [1,D]@[D,C]; doing it per grid step inside the kernel only adds
    #  MXU/XLU latency with zero throughput benefit.)
    ctx_c = jnp.mean(cond_ca[0], axis=0) @ w2        # [C]
    ctx_u = jnp.mean(uncond_ca[0], axis=0) @ w2      # [C]
    ctx = jnp.stack([ctx_c, ctx_u], axis=1).astype(jnp.float32)   # [C, 2]

    # Split the channel-mix weight instead of concatenating activations:
    # rows [:C] act on z, rows [C:] act on c_concat; transpose to [Cout, Cin].
    w1a = w1t[:c, :].T
    w1b = w1t[c:, :].T

    params = jnp.stack([sigma[0].astype(jnp.float32),
                        jnp.asarray(text_cfg_scale, jnp.float32),
                        jnp.asarray(image_cfg_scale, jnp.float32)])

    out_l = _cfg_denoiser_pallas(params, z_l, ccond_l, cuncond_l, w1a, w1b, ctx)
    return out_l.reshape(1, c, h, w)                 # free reshape back to NCHW


# -----------------------------------------------------------------------------
# Pure-JAX reference: literal translation of the original module (tile x3,
# concat conditioning, 3 full branch evaluations, chunk, CFG combine).
# -----------------------------------------------------------------------------
def _nchw_to_l(x):   # [N, C, H, W] -> [N, H*W, C]
    n, c, h, w = x.shape
    return jnp.transpose(x, (0, 2, 3, 1)).reshape(n, h * w, c)


def _l_to_nchw(x, h, w):   # [N, H*W, C] -> [N, C, H, W]
    n, hw, c = x.shape
    return jnp.transpose(x.reshape(n, h, w, c), (0, 3, 1, 2))


def _inner_model_ref(z, sigma, ca, cc, w1t, w2):
    n, c, h, w = z.shape
    z_l = _nchw_to_l(z)
    cc_l = _nchw_to_l(cc)
    hcat = jnp.concatenate([z_l, cc_l], axis=-1)                # [N, HW, Cin]
    feat = jnp.einsum('nsc,cd->nsd', hcat, w1t)
    ctx = jnp.mean(ca, axis=1) @ w2                             # [N, C]
    scale = 1.0 / (sigma ** 2 + 1.0)
    out_l = (feat + ctx[:, None, :]) * scale[:, None, None]
    return _l_to_nchw(out_l, h, w)


def cfg_denoiser_ref(z, sigma, cond_ca, cond_cc, uncond_ca, uncond_cc,
                     text_cfg_scale, image_cfg_scale, w1t, w2):
    cfg_z = jnp.tile(z, (3, 1, 1, 1))
    cfg_sigma = jnp.tile(sigma, (3,))
    cfg_ca = jnp.concatenate([cond_ca, uncond_ca, uncond_ca], axis=0)
    cfg_cc = jnp.concatenate([cond_cc, cond_cc, uncond_cc], axis=0)
    out = _inner_model_ref(cfg_z, cfg_sigma, cfg_ca, cfg_cc, w1t, w2)
    out_cond, out_img_cond, out_uncond = out[0:1], out[1:2], out[2:3]
    return (out_uncond
            + text_cfg_scale * (out_cond - out_img_cond)
            + image_cfg_scale * (out_img_cond - out_uncond))


if __name__ == "__main__":
    key = jax.random.PRNGKey(0)
    kz, ks, kca, kcc, kuca, kucc, kw1, kw2 = jax.random.split(key, 8)

    C, H, W = 4, 16, 16          # latent channels / spatial
    S, D = 8, 32                 # text sequence / embedding dim
    C_CC = 4                     # image-conditioning latent channels

    z = jax.random.normal(kz, (1, C, H, W), dtype=jnp.float32)
    sigma = jnp.abs(jax.random.normal(ks, (1,), dtype=jnp.float32)) + 0.5
    cond_ca = jax.random.normal(kca, (1, S, D), dtype=jnp.float32)
    cond_cc = jax.random.normal(kcc, (1, C_CC, H, W), dtype=jnp.float32)
    uncond_ca = jax.random.normal(kuca, (1, S, D), dtype=jnp.float32)
    uncond_cc = jax.random.normal(kucc, (1, C_CC, H, W), dtype=jnp.float32)

    # Deterministic synthetic inner-model parameters.
    # TODO(synk): the real inner_model is a pretrained latent-diffusion UNet;
    # it is replaced here by this small deterministic linear surrogate.
    w1t = jax.random.normal(kw1, (C + C_CC, C), dtype=jnp.float32) * 0.1   # channel mix
    w2 = jax.random.normal(kw2, (D, C), dtype=jnp.float32) * 0.1           # text proj

    text_cfg_scale = 7.5
    image_cfg_scale = 1.5

    out = cfg_denoiser_forward(z, sigma, cond_ca, cond_cc, uncond_ca, uncond_cc,
                               text_cfg_scale, image_cfg_scale, w1t, w2)
    out = jax.block_until_ready(out)

    ref = cfg_denoiser_ref(z, sigma, cond_ca, cond_cc, uncond_ca, uncond_cc,
                           text_cfg_scale, image_cfg_scale, w1t, w2)
    ref = jax.block_until_ready(ref)

    assert out.shape == (1, C, H, W), out.shape
    np.testing.assert_allclose(np.asarray(out), np.asarray(ref), rtol=1e-5, atol=1e-5)
    print("KERNEL_OK")
</pallas_src>

<mosaic_0001>
module attributes {stable_mosaic.version = 11 : i64} {
  func.func @_cfg_denoiser_kernel(%arg0: i32, %arg1: memref<3xf32, #tpu.memory_space<smem>>, %arg2: memref<4x128xf32, #tpu.memory_space<vmem>>, %arg3: memref<4x128xf32, #tpu.memory_space<vmem>>, %arg4: memref<4x128xf32, #tpu.memory_space<vmem>>, %arg5: memref<4x4xf32, #tpu.memory_space<vmem>>, %arg6: memref<4x4xf32, #tpu.memory_space<vmem>>, %arg7: memref<4x2xf32, #tpu.memory_space<vmem>>, %arg8: memref<4x128xf32, #tpu.memory_space<vmem>>) attributes {dimension_semantics = [#tpu.dimension_semantics<parallel>], iteration_bounds = array<i64: 2>, scalar_prefetch = 0 : i64, scratch_operands = 0 : i64, tpu.core_type = #tpu.core_type<tc>, window_params = [{transform_indices = @transform_0, window_bounds = array<i64: 3>}, {transform_indices = @transform_1, window_bounds = array<i64: 4, 128>}, {transform_indices = @transform_2, window_bounds = array<i64: 4, 128>}, {transform_indices = @transform_3, window_bounds = array<i64: 4, 128>}, {pipeline_mode = #tpu.pipeline_mode<synchronous>, transform_indices = @transform_4, window_bounds = array<i64: 4, 4>}, {pipeline_mode = #tpu.pipeline_mode<synchronous>, transform_indices = @transform_5, window_bounds = array<i64: 4, 4>}, {pipeline_mode = #tpu.pipeline_mode<synchronous>, transform_indices = @transform_6, window_bounds = array<i64: 4, 2>}, {transform_indices = @transform_7, window_bounds = array<i64: 4, 128>}]} {
    %c0 = arith.constant 0 : index
    %0 = memref.load %arg1[%c0] : memref<3xf32, #tpu.memory_space<smem>>
    %c1 = arith.constant 1 : index
    %1 = memref.load %arg1[%c1] : memref<3xf32, #tpu.memory_space<smem>>
    %c2 = arith.constant 2 : index
    %2 = memref.load %arg1[%c2] : memref<3xf32, #tpu.memory_space<smem>>
    %3 = arith.mulf %0, %0 : f32
    %cst = arith.constant 1.000000e+00 : f32
    %4 = arith.addf %3, %cst : f32
    %cst_0 = arith.constant 1.000000e+00 : f32
    %5 = arith.divf %cst_0, %4 : f32
    %c0_1 = arith.constant 0 : index
    %c0_2 = arith.constant 0 : index
    %6 = vector.load %arg5[%c0_1, %c0_2] : memref<4x4xf32, #tpu.memory_space<vmem>>, vector<4x4xf32>
    %c0_3 = arith.constant 0 : index
    %c0_4 = arith.constant 0 : index
    %7 = vector.load %arg2[%c0_3, %c0_4] : memref<4x128xf32, #tpu.memory_space<vmem>>, vector<4x128xf32>
    %cst_5 = arith.constant dense<0.000000e+00> : vector<4x128xf32>
    %8 = tpu.matmul %6, %7, %cst_5 {dimension_numbers = #tpu.dot_dimension_numbers<[1], [0], [0], [1], [0, 0, 1, 1], [], []>} : vector<4x4xf32>, vector<4x128xf32>, vector<4x128xf32> -> vector<4x128xf32>
    %c0_6 = arith.constant 0 : index
    %c0_7 = arith.constant 0 : index
    %9 = vector.load %arg6[%c0_6, %c0_7] : memref<4x4xf32, #tpu.memory_space<vmem>>, vector<4x4xf32>
    %c0_8 = arith.constant 0 : index
    %c0_9 = arith.constant 0 : index
    %10 = vector.load %arg3[%c0_8, %c0_9] : memref<4x128xf32, #tpu.memory_space<vmem>>, vector<4x128xf32>
    %cst_10 = arith.constant dense<0.000000e+00> : vector<4x128xf32>
    %11 = tpu.matmul %9, %10, %cst_10 {dimension_numbers = #tpu.dot_dimension_numbers<[1], [0], [0], [1], [0, 0, 1, 1], [], []>} : vector<4x4xf32>, vector<4x128xf32>, vector<4x128xf32> -> vector<4x128xf32>
    %c0_11 = arith.constant 0 : index
    %c0_12 = arith.constant 0 : index
    %12 = vector.load %arg6[%c0_11, %c0_12] : memref<4x4xf32, #tpu.memory_space<vmem>>, vector<4x4xf32>
    %c0_13 = arith.constant 0 : index
    %c0_14 = arith.constant 0 : index
    %13 = vector.load %arg4[%c0_13, %c0_14] : memref<4x128xf32, #tpu.memory_space<vmem>>, vector<4x128xf32>
    %cst_15 = arith.constant dense<0.000000e+00> : vector<4x128xf32>
    %14 = tpu.matmul %12, %13, %cst_15 {dimension_numbers = #tpu.dot_dimension_numbers<[1], [0], [0], [1], [0, 0, 1, 1], [], []>} : vector<4x4xf32>, vector<4x128xf32>, vector<4x128xf32> -> vector<4x128xf32>
    %c0_16 = arith.constant 0 : index
    %c0_17 = arith.constant 0 : index
    %15 = vector.load %arg7[%c0_16, %c0_17] : memref<4x2xf32, #tpu.memory_space<vmem>>, vector<4x1xf32>
    %c0_18 = arith.constant 0 : index
    %c1_19 = arith.constant 1 : index
    %16 = vector.load %arg7[%c0_18, %c1_19] : memref<4x2xf32, #tpu.memory_space<vmem>>, vector<4x1xf32>
    %17 = arith.addf %8, %11 : vector<4x128xf32>
    %18 = vector.broadcast %15 : vector<4x1xf32> to vector<4x128xf32>
    %19 = arith.addf %17, %18 : vector<4x128xf32>
    %20 = vector.broadcast %5 : f32 to vector<4x128xf32>
    %21 = arith.mulf %19, %20 : vector<4x128xf32>
    %22 = arith.addf %8, %11 : vector<4x128xf32>
    %23 = vector.broadcast %16 : vector<4x1xf32> to vector<4x128xf32>
    %24 = arith.addf %22, %23 : vector<4x128xf32>
    %25 = vector.broadcast %5 : f32 to vector<4x128xf32>
    %26 = arith.mulf %24, %25 : vector<4x128xf32>
    %27 = arith.addf %8, %14 : vector<4x128xf32>
    %28 = vector.broadcast %16 : vector<4x1xf32> to vector<4x128xf32>
    %29 = arith.addf %27, %28 : vector<4x128xf32>
    %30 = vector.broadcast %5 : f32 to vector<4x128xf32>
    %31 = arith.mulf %29, %30 : vector<4x128xf32>
    %32 = arith.subf %21, %26 : vector<4x128xf32>
    %33 = vector.broadcast %1 : f32 to vector<4x128xf32>
    %34 = arith.mulf %33, %32 : vector<4x128xf32>
    %35 = arith.addf %31, %34 : vector<4x128xf32>
    %36 = arith.subf %26, %31 : vector<4x128xf32>
    %37 = vector.broadcast %2 : f32 to vector<4x128xf32>
    %38 = arith.mulf %37, %36 : vector<4x128xf32>
    %39 = arith.addf %35, %38 : vector<4x128xf32>
    %c0_20 = arith.constant 0 : index
    %c0_21 = arith.constant 0 : index
    %40 = vector.load %arg8[%c0_20, %c0_21] : memref<4x128xf32, #tpu.memory_space<vmem>>, vector<4x128xf32>
    tpu.vector_store %arg8[%c0_20, %c0_21], %39 {strides = array<i32>} : memref<4x128xf32, #tpu.memory_space<vmem>>, vector<4x128xf32>,
    return
  }
  func.func @transform_0(%arg0: i32) -> i32 {
    %c0_i32 = arith.constant 0 : i32
    %c0_i32_0 = arith.constant 0 : i32
    return %c0_i32 : i32
  }
  func.func @transform_1(%arg0: i32) -> (i32, i32) {
    %c0_i32 = arith.constant 0 : i32
    %c0_i32_0 = arith.constant 0 : i32
    return %c0_i32, %arg0 : i32, i32
  }
  func.func @transform_2(%arg0: i32) -> (i32, i32) {
    %c0_i32 = arith.constant 0 : i32
    %c0_i32_0 = arith.constant 0 : i32
    return %c0_i32, %arg0 : i32, i32
  }
  func.func @transform_3(%arg0: i32) -> (i32, i32) {
    %c0_i32 = arith.constant 0 : i32
    %c0_i32_0 = arith.constant 0 : i32
    return %c0_i32, %arg0 : i32, i32
  }
  func.func @transform_4(%arg0: i32) -> (i32, i32) {
    %c0_i32 = arith.constant 0 : i32
    %c0_i32_0 = arith.constant 0 : i32
    %c0_i32_1 = arith.constant 0 : i32
    return %c0_i32, %c0_i32_0 : i32, i32
  }
  func.func @transform_5(%arg0: i32) -> (i32, i32) {
    %c0_i32 = arith.constant 0 : i32
    %c0_i32_0 = arith.constant 0 : i32
    %c0_i32_1 = arith.constant 0 : i32
    return %c0_i32, %c0_i32_0 : i32, i32
  }
  func.func @transform_6(%arg0: i32) -> (i32, i32) {
    %c0_i32 = arith.constant 0 : i32
    %c0_i32_0 = arith.constant 0 : i32
    %c0_i32_1 = arith.constant 0 : i32
    return %c0_i32, %c0_i32_0 : i32, i32
  }
  func.func @transform_7(%arg0: i32) -> (i32, i32) {
    %c0_i32 = arith.constant 0 : i32
    %c0_i32_0 = arith.constant 0 : i32
    return %c0_i32, %arg0 : i32, i32
  }
}

</mosaic_0001>

<bundles_post_ra>
// kernel: cfg_denoiser_forward.1
= control target key start
LH: loop header
LB: loop body
LE: loop exit
PB: predicated region body
PF: predicated region fallthrough
CT: control target
= control target key end

     0   :  { %12 = vsyncpa [#allocation3], 0  ;;  %s822_s24 = smov 0   ;;  %s891_s0 = inlined_call_operand.vmem [shape: f32[3], index: 0, kind: input, shape index: {}]   ;;  %s892_s1 = inlined_call_operand.vmem [shape: f32[4,256], index: 1, kind: input, shape index: {}]   ;;  %s893_s2 = inlined_call_operand.vmem [shape: f32[4,256], index: 2, kind: input, shape index: {}]   ;;  %s894_s3 = inlined_call_operand.vmem [shape: f32[4,256], index: 3, kind: input, shape index: {}]   ;;  %s895_s4 = inlined_call_operand.vmem [shape: f32[4,4], index: 4, kind: input, shape index: {}]   ;;  %s896_s5 = inlined_call_operand.vmem [shape: f32[4,4], index: 5, kind: input, shape index: {}]   ;;  %s897_s6 = inlined_call_operand.vmem [shape: f32[4,2], index: 6, kind: input, shape index: {}]   ;;  %s898_s7 = inlined_call_operand.vmem [shape: f32[4,256], index: 7, kind: output, shape index: {}]  }
   0x1 LB: > { %s828_s25 = sadd.s32 4294967295, %s775_s24   ;;  %p681_p0 = scmp.ge.s32.totalorder %s775_s24, 1  ;;  %s775_s24 = sphi %s822_s24, %s18_s24  }
   0x2   : > { %p211_p1 = scmp.lt.s32.totalorder %s775_s24, 3  ;;  %s224_s28 = sshll.u32 %s891_s0, 4  ;;  %s225_s28 = int_to_ptr.vmem [resolvable:$true] %s224_s28 }
   0x3   : > { %p731_p3 = scmp.eq.s32.totalorder %s828_s25, 0  ;;  %s750_s30 = scalar_lea.vmem %s225_s28, 16 }
   0x4   : > { %p835_p2 = pnand %p681_p0, %p211_p1  ;;  %p751_p6 = scmp.ne.s32.totalorder %s225_s28, %s750_s30 }
   0x5   : > { %p758_p10 = scmp.lt.s32.totalorder %s225_s28, %s225_s28  ;;  %p759_p11 = scmp.lt.s32.totalorder %s750_s30, %s750_s30 }
   0x6   : > { %p727_p4 = pneg %p835_p2 }
   0x7   : > { %p760_p12 = por %p759_p11, %p758_p10 }
   0x8   : > { %p728_p5 = pnand %p731_p3, %p727_p4 }
   0xa   : > { %p752_p7 = pneg %p728_p5 }
   0xc   : > { %p753_p8 = pnand %p752_p7, %p751_p6 }
   0xe   : > { %p754_p9 = pneg %p753_p8 }
  0x10   : > { %p761_p13 = pnand %p760_p12, %p754_p9 }
  0x12   : > { %764 = shalt.err (!%p761_p13)
}
  0x13   : > { %s777_s8 = smov [#allocation2]   ;;  %267 = sbr.rel (%p835_p2) target bundleno = 265 (0x109), region = 48 }
  0x14   : > { %730 = dma.vmem_to_smem (!%p728_p5), %s225_s28, 16, %s777_s8, [#allocation3]  }
  0x1a   : > { %770 = dma.done.wait (%p731_p3), [#allocation3], 16  }
  0x1b   : > { %772 = vsyncadd (%p731_p3), [#allocation3], 4294967280 }
  0x1c   : > { %273 = sfence }
  0x1d   : > { %p306_p0 = scmp.lt.s32.totalorder %s828_s25, 1  ;;  %v778_v0 = vmov 0.0   ;;  %v562_v1 = vld [vmem:[%s897_s6] sm:$0xf]  ;;  %vm779_vm0 = vmmov 0   ;;  %v780_v2 = vmov 0  }
  0x1e   : > { %706 = vmatprep.subr.mxu0 %v778_v0  ;;  %711 = vmatprep.subr.mxu1 %v778_v0  ;;  %s322_s11 = sld [smem:[#allocation2]]  ;;  %vm336_vm1 = vcmask 1043456   ;;  %v330_v3 = vld [vmem:[%s895_s4] sm:$0xf]  ;;  %vm332_vm2 = vcmask 31744   ;;  %v781_v8 = vmov 1  }
  0x1f   : > { %s901_s25 = smov (!%p306_p0, %s828_s25), 1  ;;  %708 = vmatprep.mubr.msk.f32.mxu0 %vm779_vm0, %v778_v0  ;;  %713 = vmatprep.mubr.msk.f32.mxu1 %vm779_vm0, %v778_v0  ;;  %v410_v5 = vld [vmem:[%s896_s5] sm:$0xf]  ;;  %s690_s29 = sld [smem:[#allocation2 + $0x1]] }
  0x20   : > { %746 = vset.pattern.permute.xlu0 %v780_v2  ;;  %s857_s12 = sshll.u32 %s901_s25, 2  ;;  %s691_s8 = sld [smem:[#allocation2 + $0x2]] }
  0x21   : > { %566 = vperm.xlu0 %746, %v562_v1   ;;  %s309_s15 = scalar_lea.vmem %s892_s1, %s857_s12  ;;  %s313_s20 = scalar_lea.vmem %s893_s2, %s857_s12 }
  0x22   : > { %v331_v4 = vld [vmem:[%s309_s15] sm:$0xf]  ;;  %s317_s26 = scalar_lea.vmem %s894_s3, %s857_s12 }
  0x23   : > { %707 = vmatpush3.msk.msra.mxu0 %vm336_vm1, %v331_v4  ;;  %v411_v6 = vld [vmem:[%s313_s20] sm:$0xf] }
  0x24   : > { %v488_v7 = vld [vmem:[%s317_s26] sm:$0xf]  ;;  %712 = vmatpush3.msk.msra.mxu1 %vm336_vm1, %v411_v6  ;;  %709 = vmatmul.mubr.msk.f32.vlgmr.msra.gmra.mrb[0].mxu0 %vm332_vm2, %v330_v3  ;;  %s325_s27 = smul.f32 %s322_s11, %s322_s11  ;;  %s321_s11 = scalar_lea.vmem %s898_s7, %s857_s12 }
  0x25   : > { %714 = vmatmul.mubr.msk.f32.vlgmr.msra.gmra.mrb[0].mxu1 %vm332_vm2, %v410_v5  ;;  %716 = vmatprep.subr.mxu0 %v778_v0  ;;  %v582_v26 = vstv %s690_s29 }
  0x26   : > { %717 = vmatpush3.msk.msra.mxu0 %vm336_vm1, %v488_v7  ;;  %718 = vmatprep.mubr.msk.f32.mxu0 %vm779_vm0, %v778_v0  ;;  %s326_s28 = sadd.f32 1.0, %s325_s27  ;;  %v586_v31 = vstv %s691_s8 }
  0x27   : > { %747 = vset.pattern.permute.xlu0 %v781_v8 }
  0x28   : > { %719 = vmatmul.mubr.msk.f32.vlgmr.msra.gmra.mrb[2].mxu0 %vm332_vm2, %v410_v5  ;;  %573 = vperm.xlu0 %747, %v562_v1   ;;  %v327_v9 = vstv %s326_s28 }
  0x29   : > { %748 = vrcp.f32 %v327_v9 }
  0x33   : > { %v749_v10 = vpop.eup %748 }
  0x34   : > { %721 = vpush %v749_v10 }
  0x65   : > { %s722_s30 = spop %721 }
  0x66   : > { %v570_v18 = vstv %s722_s30 }
  0xa0   : > { %v567_v11 = vpop.permute.xlu0 %566 }
  0xa7   : > { %v574_v13 = vpop.permute.xlu0 %573 }
  0xf7   : > { %v406_v12 = vpop.f32.mrb[0].mxu0 }
  0xf8   : > { %v484_v14 = vpop.f32.mrb[0].mxu1  ;;  %v710_v15 = vpop.f32.mrb[1].mxu0 }
  0xf9   : > { %v563_v16 = vadd.f32 %v484_v14, %v406_v12  ;;  %v715_v17 = vpop.f32.mrb[1].mxu1 }
  0xfb   : > { %v569_v19 = vadd.f32 %v567_v11, %v563_v16  ;;  %v576_v20 = vadd.f32 %v574_v13, %v563_v16  ;;  %v558_v21 = vpop.f32.mrb[2].mxu0 }
  0xfc   : > { %v578_v22 = vadd.f32 %v558_v21, %v406_v12  ;;  %v720_v23 = vpop.f32.mrb[3].mxu0 }
  0xfd   : > { %v571_v24 = vmul.f32 %v570_v18, %v569_v19  ;;  %v577_v25 = vmul.f32 %v576_v20, %v570_v18 }
  0xfe   : > { %v579_v27 = vadd.f32 %v578_v22, %v574_v13 }
  0xff   : > { %v581_v28 = vsub.f32 %v571_v24, %v577_v25 }
 0x100   : > { %v580_v29 = vmul.f32 %v579_v27, %v570_v18 }
 0x101   : > { %v583_v30 = vmul.f32 %v582_v26, %v581_v28 }
 0x102   : > { %v585_v32 = vsub.f32 %v577_v25, %v580_v29 }
 0x103   : > { %v584_v33 = vadd.f32 %v583_v30, %v580_v29 }
 0x104   : > { %v587_v34 = vmul.f32 %v586_v31, %v585_v32 }
 0x106   : > { %v588_v35 = vadd.f32 %v587_v34, %v584_v33 }
 0x108   : > { %589 = vst [vmem:[%s321_s11] sm:$0xf] %v588_v35 }
 0x109 PF: > { %s18_s24 = sadd.s32 1, %s775_s24  }
 0x10a   : > { %p15_p1 = scmp.ge.s32.totalorder %s18_s24, 4  }
 0x10c   :  { %17 = sbr.rel (!%p15_p1) target bundleno = 1 (0x1), region = 89 }
 0x113   :  { %609 = vsyncpa [#allocation3], 1 }
 0x114   :  { %611 = vsyncpa [#allocation3 + $0x1], 1 }

</bundles_post_ra>
